<compile_context>
chip_gen: v7x
topology: tpu7x:2x2x1
jax: 0.10.0
libtpu: 0.0.40
codegen_flags: <defaults>
</compile_context>

<pallas_src>
import jax
import jax.numpy as jnp
from jax.experimental import pallas as pl
from jax.experimental.pallas import tpu as pltpu


def _round_up(n, m):
    return ((n + m - 1) // m) * m


def _pick_batch_tile(batch, tb):
    """Lane-dense batch tile: multiple of 128, capped to the (rounded) batch,
    and split so the "parallel" batch axis has >= 2 steps when the batch is big
    enough (keeps both v7x TensorCores busy)."""
    tb = max(128, min(_round_up(tb, 128), _round_up(batch, 128)))
    if batch >= 256 and pl.cdiv(batch, tb) < 2:
        tb = max(128, _round_up(pl.cdiv(batch, 2), 128))
    return tb


def _feature_nn_kernel(x_ref, w1_ref, b1_ref, w2_ref, b2_ref, w3_ref, b3_ref,
                       o_ref):
    # Block shapes (leading dim = the current feature):
    #   x_ref  (1, 1, TB)     o_ref  (1, 1, TB)
    #   w1_ref (1, H1, 1)     b1_ref (1, H1, 1)
    #   w2_ref (1, H2, H1)    b2_ref (1, H2, 1)
    #   w3_ref (1, H2, 1)     b3_ref (1, 1, 1)
    x = x_ref[0]                                        # (1, TB), batch on lanes

    # Layer 1: Linear(1 -> H1).  K == 1 -> VPU broadcast outer product; a
    # near-empty MXU pass would be pure push/drain latency.
    # TODO(synk): training-mode Dropout(p=0.5) omitted (eval mode = identity);
    # it would need pltpu.prng_seed / prng_random_bits masking.
    h = jnp.maximum(w1_ref[0] * x + b1_ref[0], 0.0)                 # (H1, TB)

    # Layer 2: Linear(H1 -> H2) -- the only real contraction -> MXU.
    # precision=HIGHEST: the default MXU precision silently truncates f32 to
    # bf16; HIGHEST keeps fp32 parity with the PyTorch reference.
    h = jnp.dot(w2_ref[0], h,
                precision=jax.lax.Precision.HIGHEST,
                preferred_element_type=jnp.float32)
    h = jnp.maximum(h + b2_ref[0], 0.0)                             # (H2, TB)

    # Layer 3: Linear(H2 -> 1).  N == 1 -> weighted reduction over the hidden
    # (sublane) axis; XLU work, skip the MXU.
    out = jnp.sum(h * w3_ref[0], axis=0, keepdims=True) + b3_ref[0]
    o_ref[0] = out.astype(o_ref.dtype)                              # (1, TB)


def nam_forward(x_fb, stacked_params, *, tb=2048):
    """Fused NAM forward: F FeatureNNs in a single pallas_call.

    x_fb: (F, B) -- row f is the input column of feature net f.
    stacked_params: (w1, b1, w2, b2, w3, b3) with shapes
      (F,H1,1), (F,H1,1), (F,H2,H1), (F,H2,1), (F,H2,1), (F,1,1).
    Returns (F, B) float32.
    """
    w1, b1, w2, b2, w3, b3 = tuple(a.astype(jnp.float32)
                                   for a in stacked_params)
    num_feat, batch = x_fb.shape
    tb = _pick_batch_tile(batch, tb)
    nb = pl.cdiv(batch, tb)

    # Batch on the lane axis; plain reshape, no pad/slice HBM round-trips.
    # Ragged tail tiles are handled by Pallas OOB masking on the last block.
    x3 = x_fb.astype(jnp.float32).reshape(num_feat, 1, batch)

    def wspec(a):
        # One feature's full weight block; the index depends only on the outer
        # (feature) grid axis, so it stays VMEM-resident across batch tiles.
        return pl.BlockSpec((1,) + a.shape[1:], lambda f, i: (f, 0, 0))

    out = pl.pallas_call(
        _feature_nn_kernel,
        out_shape=jax.ShapeDtypeStruct((num_feat, 1, batch), jnp.float32),
        grid=(num_feat, nb),                 # feature outer, batch-tile inner
        in_specs=[
            pl.BlockSpec((1, 1, tb), lambda f, i: (f, 0, i)),     # x tile
            wspec(w1), wspec(b1), wspec(w2), wspec(b2), wspec(w3), wspec(b3),
        ],
        out_specs=pl.BlockSpec((1, 1, tb), lambda f, i: (f, 0, i)),
        compiler_params=pltpu.CompilerParams(
            dimension_semantics=("parallel", "parallel")),
    )(x3, w1, b1, w2, b2, w3, b3)
    return out.reshape(num_feat, batch)


def feature_nn_forward(x, params, *, tb=2048):
    """Single FeatureNN forward (the PyTorch module): x (B,) -> (B, 1, 1).

    `params` follow the torch.nn.Linear convention: w (out, in), b (out,).
    """
    w1, b1, w2, b2, w3, b3 = params
    H1, H2 = w1.shape[0], w2.shape[0]
    B = x.shape[0]
    stacked = (w1.reshape(1, H1, 1), b1.reshape(1, H1, 1),
               w2.reshape(1, H2, H1), b2.reshape(1, H2, 1),
               w3.reshape(1, H2, 1), b3.reshape(1, 1, 1))
    out = nam_forward(x.reshape(1, B), stacked, tb=tb)        # (1, B)
    return out.reshape(B, 1, 1)     # the two unsqueezes of the PyTorch forward


def init_params(key, n_layers):
    """torch.nn.Linear-style init: w (out, in), b (out,), U[-1/sqrt(fan_in), +]."""
    params = []
    prev = 1
    dims = list(n_layers) + [1]
    keys = jax.random.split(key, 2 * len(dims))
    for i, n in enumerate(dims):
        bound = 1.0 / float(prev) ** 0.5
        w = jax.random.uniform(keys[2 * i], (n, prev), jnp.float32, -bound, bound)
        b = jax.random.uniform(keys[2 * i + 1], (n,), jnp.float32, -bound, bound)
        params.extend([w, b])
        prev = n
    return tuple(params)


def stack_params(per_feature_params):
    """List of torch-convention param tuples -> fused-NAM stacked layout."""
    ws1, bs1, ws2, bs2, ws3, bs3 = zip(*per_feature_params)
    H1, H2 = ws1[0].shape[0], ws2[0].shape[0]
    return (jnp.stack([w.reshape(H1, 1) for w in ws1]),
            jnp.stack([b.reshape(H1, 1) for b in bs1]),
            jnp.stack(list(ws2)),
            jnp.stack([b.reshape(H2, 1) for b in bs2]),
            jnp.stack([w.reshape(H2, 1) for w in ws3]),
            jnp.stack([b.reshape(1, 1) for b in bs3]))


def _ref_feature_nn(x, params):
    """Pure-JAX fp32 reference (PyTorch convention: y = x @ w.T + b)."""
    w1, b1, w2, b2, w3, b3 = params
    hp = jax.lax.Precision.HIGHEST
    h = jnp.maximum(jnp.dot(x.reshape(-1, 1), w1.T, precision=hp) + b1, 0.0)
    h = jnp.maximum(jnp.dot(h, w2.T, precision=hp) + b2, 0.0)
    return jnp.dot(h, w3.T, precision=hp) + b3            # (B, 1)


if __name__ == "__main__":
    key = jax.random.PRNGKey(0)
    k_x, k_p, k_xf = jax.random.split(key, 3)

    n_layers = (32, 32)   # hidden widths H1, H2
    batch = 8

    # --- single FeatureNN (the PyTorch module) -------------------------------
    x = jax.random.normal(k_x, (batch,), dtype=jnp.float32)
    params = init_params(k_p, n_layers)

    out = feature_nn_forward(x, params)
    jax.block_until_ready(out)

    ref = _ref_feature_nn(x, params).reshape(batch, 1, 1)
    assert out.shape == (batch, 1, 1)
    assert jnp.allclose(out, ref, atol=1e-5, rtol=1e-5), "FeatureNN mismatch"

    # --- fused NAM path: 4 feature nets in one pallas_call -------------------
    n_feat = 4
    xf = jax.random.normal(k_xf, (n_feat, batch), dtype=jnp.float32)
    per_feat = [init_params(jax.random.fold_in(k_p, f), n_layers)
                for f in range(n_feat)]
    out_f = nam_forward(xf, stack_params(per_feat))
    jax.block_until_ready(out_f)

    ref_f = jnp.stack([_ref_feature_nn(xf[f], per_feat[f]).reshape(batch)
                       for f in range(n_feat)])
    assert out_f.shape == (n_feat, batch)
    assert jnp.allclose(out_f, ref_f, atol=1e-5, rtol=1e-5), "fused NAM mismatch"

    print("KERNEL_OK")
</pallas_src>

<mosaic_0001>
module attributes {stable_mosaic.version = 11 : i64} {
  func.func @_feature_nn_kernel(%arg0: i32, %arg1: i32, %arg2: memref<1x1x128xf32, #tpu.memory_space<vmem>>, %arg3: memref<1x32x1xf32, #tpu.memory_space<vmem>>, %arg4: memref<1x32x1xf32, #tpu.memory_space<vmem>>, %arg5: memref<1x32x32xf32, #tpu.memory_space<vmem>>, %arg6: memref<1x32x1xf32, #tpu.memory_space<vmem>>, %arg7: memref<1x32x1xf32, #tpu.memory_space<vmem>>, %arg8: memref<1x1x1xf32, #tpu.memory_space<vmem>>, %arg9: memref<1x1x128xf32, #tpu.memory_space<vmem>>) attributes {dimension_semantics = [#tpu.dimension_semantics<parallel>, #tpu.dimension_semantics<parallel>], iteration_bounds = array<i64: 1, 1>, scalar_prefetch = 0 : i64, scratch_operands = 0 : i64, tpu.core_type = #tpu.core_type<tc>, window_params = [{transform_indices = @transform_0, window_bounds = array<i64: 1, 1, 128>}, {transform_indices = @transform_1, window_bounds = array<i64: 1, 32, 1>}, {transform_indices = @transform_2, window_bounds = array<i64: 1, 32, 1>}, {transform_indices = @transform_3, window_bounds = array<i64: 1, 32, 32>}, {transform_indices = @transform_4, window_bounds = array<i64: 1, 32, 1>}, {transform_indices = @transform_5, window_bounds = array<i64: 1, 32, 1>}, {transform_indices = @transform_6, window_bounds = array<i64: 1, 1, 1>}, {transform_indices = @transform_7, window_bounds = array<i64: 1, 1, 128>}]} {
    %c0 = arith.constant 0 : index
    %c0_0 = arith.constant 0 : index
    %c0_1 = arith.constant 0 : index
    %0 = vector.load %arg2[%c0, %c0_0, %c0_1] : memref<1x1x128xf32, #tpu.memory_space<vmem>>, vector<1x1x128xf32>
    %1 = vector.shape_cast %0 : vector<1x1x128xf32> to vector<1x128xf32>
    %c0_2 = arith.constant 0 : index
    %c0_3 = arith.constant 0 : index
    %c0_4 = arith.constant 0 : index
    %2 = vector.load %arg3[%c0_2, %c0_3, %c0_4] : memref<1x32x1xf32, #tpu.memory_space<vmem>>, vector<1x32x1xf32>
    %3 = vector.shape_cast %2 : vector<1x32x1xf32> to vector<32x1xf32>
    %4 = vector.broadcast %3 : vector<32x1xf32> to vector<32x128xf32>
    %5 = vector.broadcast %1 : vector<1x128xf32> to vector<32x128xf32>
    %6 = arith.mulf %4, %5 : vector<32x128xf32>
    %c0_5 = arith.constant 0 : index
    %c0_6 = arith.constant 0 : index
    %c0_7 = arith.constant 0 : index
    %7 = vector.load %arg4[%c0_5, %c0_6, %c0_7] : memref<1x32x1xf32, #tpu.memory_space<vmem>>, vector<1x32x1xf32>
    %8 = vector.shape_cast %7 : vector<1x32x1xf32> to vector<32x1xf32>
    %9 = vector.broadcast %8 : vector<32x1xf32> to vector<32x128xf32>
    %10 = arith.addf %6, %9 : vector<32x128xf32>
    %cst = arith.constant 0.000000e+00 : f32
    %11 = vector.broadcast %cst : f32 to vector<32x128xf32>
    %12 = arith.maximumf %10, %11 : vector<32x128xf32>
    %c0_8 = arith.constant 0 : index
    %c0_9 = arith.constant 0 : index
    %c0_10 = arith.constant 0 : index
    %13 = vector.load %arg5[%c0_8, %c0_9, %c0_10] : memref<1x32x32xf32, #tpu.memory_space<vmem>>, vector<1x32x32xf32>
    %14 = vector.shape_cast %13 : vector<1x32x32xf32> to vector<32x32xf32>
    %cst_11 = arith.constant dense<0.000000e+00> : vector<32x128xf32>
    %15 = tpu.matmul %14, %12, %cst_11 {dimension_numbers = #tpu.dot_dimension_numbers<[1], [0], [0], [1], [0, 0, 1, 1], [], []>, precision = #tpu.contract_precision<fp32>} : vector<32x32xf32>, vector<32x128xf32>, vector<32x128xf32> -> vector<32x128xf32>
    %c0_12 = arith.constant 0 : index
    %c0_13 = arith.constant 0 : index
    %c0_14 = arith.constant 0 : index
    %16 = vector.load %arg6[%c0_12, %c0_13, %c0_14] : memref<1x32x1xf32, #tpu.memory_space<vmem>>, vector<1x32x1xf32>
    %17 = vector.shape_cast %16 : vector<1x32x1xf32> to vector<32x1xf32>
    %18 = vector.broadcast %17 : vector<32x1xf32> to vector<32x128xf32>
    %19 = arith.addf %15, %18 : vector<32x128xf32>
    %cst_15 = arith.constant 0.000000e+00 : f32
    %20 = vector.broadcast %cst_15 : f32 to vector<32x128xf32>
    %21 = arith.maximumf %19, %20 : vector<32x128xf32>
    %c0_16 = arith.constant 0 : index
    %c0_17 = arith.constant 0 : index
    %c0_18 = arith.constant 0 : index
    %22 = vector.load %arg7[%c0_16, %c0_17, %c0_18] : memref<1x32x1xf32, #tpu.memory_space<vmem>>, vector<1x32x1xf32>
    %23 = vector.shape_cast %22 : vector<1x32x1xf32> to vector<32x1xf32>
    %24 = vector.broadcast %23 : vector<32x1xf32> to vector<32x128xf32>
    %25 = arith.mulf %21, %24 : vector<32x128xf32>
    %cst_19 = arith.constant dense<0.000000e+00> : vector<128xf32>
    %26 = vector.multi_reduction <add>, %25, %cst_19 [0] : vector<32x128xf32> to vector<128xf32>
    %27 = vector.shape_cast %26 : vector<128xf32> to vector<1x128xf32>
    %c0_20 = arith.constant 0 : index
    %c0_21 = arith.constant 0 : index
    %c0_22 = arith.constant 0 : index
    %28 = vector.load %arg8[%c0_20, %c0_21, %c0_22] : memref<1x1x1xf32, #tpu.memory_space<vmem>>, vector<1x1x1xf32>
    %29 = vector.shape_cast %28 : vector<1x1x1xf32> to vector<1x1xf32>
    %30 = vector.broadcast %29 : vector<1x1xf32> to vector<1x128xf32>
    %31 = arith.addf %27, %30 : vector<1x128xf32>
    %c0_23 = arith.constant 0 : index
    %c0_24 = arith.constant 0 : index
    %c0_25 = arith.constant 0 : index
    %32 = vector.load %arg9[%c0_23, %c0_24, %c0_25] : memref<1x1x128xf32, #tpu.memory_space<vmem>>, vector<1x1x128xf32>
    %33 = vector.shape_cast %32 : vector<1x1x128xf32> to vector<1x128xf32>
    %34 = vector.shape_cast %31 : vector<1x128xf32> to vector<1x1x128xf32>
    tpu.vector_store %arg9[%c0_23, %c0_24, %c0_25], %34 {strides = array<i32>} : memref<1x1x128xf32, #tpu.memory_space<vmem>>, vector<1x1x128xf32>,
    return
  }
  func.func @transform_0(%arg0: i32, %arg1: i32) -> (i32, i32, i32) {
    %c0_i32 = arith.constant 0 : i32
    %c0_i32_0 = arith.constant 0 : i32
    return %arg0, %c0_i32, %arg1 : i32, i32, i32
  }
  func.func @transform_1(%arg0: i32, %arg1: i32) -> (i32, i32, i32) {
    %c0_i32 = arith.constant 0 : i32
    %c0_i32_0 = arith.constant 0 : i32
    %c0_i32_1 = arith.constant 0 : i32
    return %arg0, %c0_i32, %c0_i32_0 : i32, i32, i32
  }
  func.func @transform_2(%arg0: i32, %arg1: i32) -> (i32, i32, i32) {
    %c0_i32 = arith.constant 0 : i32
    %c0_i32_0 = arith.constant 0 : i32
    %c0_i32_1 = arith.constant 0 : i32
    return %arg0, %c0_i32, %c0_i32_0 : i32, i32, i32
  }
  func.func @transform_3(%arg0: i32, %arg1: i32) -> (i32, i32, i32) {
    %c0_i32 = arith.constant 0 : i32
    %c0_i32_0 = arith.constant 0 : i32
    %c0_i32_1 = arith.constant 0 : i32
    return %arg0, %c0_i32, %c0_i32_0 : i32, i32, i32
  }
  func.func @transform_4(%arg0: i32, %arg1: i32) -> (i32, i32, i32) {
    %c0_i32 = arith.constant 0 : i32
    %c0_i32_0 = arith.constant 0 : i32
    %c0_i32_1 = arith.constant 0 : i32
    return %arg0, %c0_i32, %c0_i32_0 : i32, i32, i32
  }
  func.func @transform_5(%arg0: i32, %arg1: i32) -> (i32, i32, i32) {
    %c0_i32 = arith.constant 0 : i32
    %c0_i32_0 = arith.constant 0 : i32
    %c0_i32_1 = arith.constant 0 : i32
    return %arg0, %c0_i32, %c0_i32_0 : i32, i32, i32
  }
  func.func @transform_6(%arg0: i32, %arg1: i32) -> (i32, i32, i32) {
    %c0_i32 = arith.constant 0 : i32
    %c0_i32_0 = arith.constant 0 : i32
    %c0_i32_1 = arith.constant 0 : i32
    return %arg0, %c0_i32, %c0_i32_0 : i32, i32, i32
  }
  func.func @transform_7(%arg0: i32, %arg1: i32) -> (i32, i32, i32) {
    %c0_i32 = arith.constant 0 : i32
    %c0_i32_0 = arith.constant 0 : i32
    return %arg0, %c0_i32, %arg1 : i32, i32, i32
  }
}

</mosaic_0001>

<bundles_post_ra>
// kernel: tpu_custom_call.1
= control target key start
LH: loop header
LB: loop body
LE: loop exit
PB: predicated region body
PF: predicated region fallthrough
CT: control target
= control target key end

     0   :  { %s1232_s0 = inlined_call_operand.vmem [shape: f32[1,1,8], index: 0, kind: input, shape index: {}]   ;;  %s1233_s1 = inlined_call_operand.vmem [shape: f32[1,32,1], index: 1, kind: input, shape index: {}]   ;;  %s1234_s2 = inlined_call_operand.vmem [shape: f32[1,32,1], index: 2, kind: input, shape index: {}]   ;;  %s1235_s3 = inlined_call_operand.vmem [shape: f32[1,32,32], index: 3, kind: input, shape index: {}]   ;;  %s1236_s4 = inlined_call_operand.vmem [shape: f32[1,32,1], index: 4, kind: input, shape index: {}]   ;;  %s1237_s5 = inlined_call_operand.vmem [shape: f32[1,32,1], index: 5, kind: input, shape index: {}]   ;;  %s1238_s6 = inlined_call_operand.<no memory space> [shape: f32[1,1,1], index: 6, kind: input, shape index: {}]   ;;  %s1239_s7 = inlined_call_operand.hbm [shape: f32[1,1,8], index: 7, kind: output, shape index: {}]  }
   0x1   :  { %v12_v0 = vstv %s1238_s6 }
   0x2   :  { %13 = vst [vmem:[#allocation2] sm:$0x1] %v12_v0 }
   0x3   :  { %v64_v1 = vld [vmem:[%s1234_s2] sm:$0xff]  ;;  %v1051_v3 = vmov 0   ;;  %v65_v4 = vld [vmem:[%s1234_s2 + $0x8] sm:$0xff] }
   0x4   :  { %v30_v2 = vld [vmem:[%s1233_s1] sm:$0xff]  ;;  %1026 = vset.pattern.permute.xlu1 %v1051_v3  ;;  %1025 = vset.pattern.permute.xlu0 %v1051_v3  ;;  %v31_v5 = vld [vmem:[%s1233_s1 + $0x8] sm:$0xff] }
   0x5   :  { %70 = vperm.xlu1 %1026, %v64_v1   ;;  %36 = vperm.xlu0 %1025, %v30_v2  }
   0x9   :  { %75 = vperm.xlu1 %1026, %v65_v4   ;;  %41 = vperm.xlu0 %1025, %v31_v5  }
   0xa   :  { %14 = vsyncpa [#allocation4], 0  ;;  %v33_v6 = vld [vmem:[%s1233_s1 + $0x18] sm:$0xff]  ;;  %v32_v7 = vld [vmem:[%s1233_s1 + $0x10] sm:$0xff]  ;;  %vm124_vm0 = vcmask 261120  }
   0xb   :  { %v67_v8 = vld [vmem:[%s1234_s2 + $0x18] sm:$0xff]  ;;  %v66_v9 = vld [vmem:[%s1234_s2 + $0x10] sm:$0xff]  ;;  %v96_v10 = vld [vmem:[%s1235_s3] sm:$0xff] }
   0xc   :  { %v101_v11 = vld [vmem:[%s1236_s4 + $0x8] sm:$0xff]  ;;  %v100_v12 = vld [vmem:[%s1236_s4] sm:$0xff]  ;;  %v126_v13 = vsel %vm124_vm0, %v96_v10, 0  ;;  %v103_v16 = vld [vmem:[%s1236_s4 + $0x18] sm:$0xff] }
   0xd   :  { %51 = vperm.xlu1 %1026, %v33_v6   ;;  %46 = vperm.xlu0 %1025, %v32_v7   ;;  %v1130_v14 = vand.u32 4294901760, %v126_v13  ;;  %v102_v17 = vld [vmem:[%s1236_s4 + $0x10] sm:$0xff]  ;;  %v756_v20 = vld [vmem:[%s1237_s5 + $0x8] sm:$0xff]  ;;  %v755_v21 = vld [vmem:[%s1237_s5] sm:$0xff] }
   0xe   :  { %v758_v23 = vld [vmem:[%s1237_s5 + $0x18] sm:$0xff]  ;;  %v757_v24 = vld [vmem:[%s1237_s5 + $0x10] sm:$0xff]  ;;  %v792_v25 = vld [vmem:[#allocation2] sm:$0x1] }
   0xf   :  { %v1133_v15 = vsub.f32 %v126_v13, %v1130_v14  ;;  %v818_v26 = vld [vmem:[%s1232_s0] ss:$0 sm:$0xff]  ;;  %v97_v27 = vld [vmem:[%s1235_s3 + $0x8] sm:$0xff]  ;;  %v98_v30 = vld [vmem:[%s1235_s3 + $0x10] sm:$0xff]  ;;  %s1052_s0 = smov [#allocation3]  }
  0x10   :  { %v129_v32 = vsel %vm124_vm0, %v97_v27, 0  ;;  %v99_v33 = vld [vmem:[%s1235_s3 + $0x18] sm:$0xff]  ;;  %v132_v35 = vsel %vm124_vm0, %v98_v30, 0  ;;  %s810_s3 = sshll.u32 %s1052_s0, 4  ;;  %s811_s3 = int_to_ptr.vmem [resolvable:$true] %s810_s3 }
  0x11   :  { %85 = vperm.xlu1 %1026, %v67_v8   ;;  %80 = vperm.xlu0 %1025, %v66_v9   ;;  %v208_v18 = vand.u32 4294901760, %v1133_v15  ;;  %v1169_v38 = vand.u32 4294901760, %v129_v32  ;;  %v135_v41 = vsel %vm124_vm0, %v99_v33, 0  ;;  %v1172_v42 = vand.u32 4294901760, %v132_v35  ;;  %s1027_s16 = scalar_lea.vmem %s811_s3, 16  ;;  %s1031_s17 = scalar_lea.vmem %s811_s3, 32 }
  0x12   :  { %v1177_v48 = vand.u32 4294901760, %v135_v41  ;;  %p1028_p0 = scmp.ne.s32.totalorder %s811_s3, %s1027_s16  ;;  %p1032_p1 = scmp.lt.s32.totalorder %s811_s3, %s811_s3 }
  0x13   :  { %v209_v19 = vsub.f32 %v1133_v15, %v208_v18  ;;  %917 = vmatprep.mubr.f32.mxu0 %v208_v18  ;;  %v1175_v47 = vsub.f32 %v129_v32, %v1169_v38  ;;  %v1182_v51 = vsub.f32 %v132_v35, %v1172_v42  ;;  %p1033_p2 = scmp.lt.s32.totalorder %s1031_s17, %s1027_s16 }
  0x14   :  { %v1187_v59 = vsub.f32 %v135_v41, %v1177_v48 }
  0x15   :  { %111 = vperm.xlu1 %1026, %v101_v11   ;;  %106 = vperm.xlu0 %1025, %v100_v12   ;;  %v210_v22 = vand.u32 4294901760, %v209_v19  ;;  %v218_v58 = vand.u32 4294901760, %v1175_v47  ;;  %v228_v1 = vand.u32 4294901760, %v1182_v51  ;;  %p1034_p3 = por %p1033_p2, %p1032_p1 }
  0x16   :  { %v238_v6 = vand.u32 4294901760, %v1187_v59 }
  0x17   :  { %875 = vmatprep.mubr.f32.mxu1 %v210_v22  ;;  %v219_v5 = vsub.f32 %v1175_v47, %v218_v58  ;;  %v229_v11 = vsub.f32 %v1182_v51, %v228_v1  ;;  %p1035_p4 = pnand %p1034_p3, %p1028_p0 }
  0x18   :  { %v239_v19 = vsub.f32 %v1187_v59, %v238_v6 }
  0x19   :  { %121 = vperm.xlu1 %1026, %v103_v16   ;;  %116 = vperm.xlu0 %1025, %v102_v17   ;;  %v220_v18 = vand.u32 4294901760, %v219_v5 }
  0x1d   :  { %766 = vperm.xlu1 %1026, %v756_v20   ;;  %761 = vperm.xlu0 %1025, %v755_v21  }
  0x21   :  { %776 = vperm.xlu1 %1026, %v758_v23   ;;  %771 = vperm.xlu0 %1025, %v757_v24   ;;  %v230_v24 = vand.u32 4294901760, %v229_v11 }
  0x25   :  { %795 = vperm.xlu0 %1025, %v792_v25  }
  0x84   :  { %v71_v28 = vpop.permute.xlu1 %70  ;;  %v37_v29 = vpop.permute.xlu0 %36 }
  0x85   :  { %v60_v31 = vmul.f32 %v818_v26, %v37_v29 }
  0x87   :  { %v88_v34 = vadd.f32 %v71_v28, %v60_v31  ;;  %v240_v28 = vand.u32 4294901760, %v239_v19 }
  0x88   :  { %v76_v36 = vpop.permute.xlu1 %75  ;;  %v42_v37 = vpop.permute.xlu0 %41 }
  0x89   :  { %v92_v39 = vmax.f32 %v88_v34, 0.0  ;;  %v61_v40 = vmul.f32 %v818_v26, %v42_v37 }
  0x8b   :  { %v138_v43 = vand.u32 4294901760, %v92_v39  ;;  %v89_v44 = vadd.f32 %v76_v36, %v61_v40 }
  0x8c   :  { %v52_v45 = vpop.permute.xlu1 %51  ;;  %v47_v46 = vpop.permute.xlu0 %46 }
  0x8d   :  { %v1179_v49 = vsub.f32 %v92_v39, %v138_v43  ;;  %v93_v50 = vmax.f32 %v89_v44, 0.0  ;;  %v63_v53 = vmul.f32 %v818_v26, %v52_v45  ;;  %v62_v54 = vmul.f32 %v818_v26, %v47_v46 }
  0x8f   :  { %v141_v52 = vand.u32 4294901760, %v93_v50  ;;  %v249_v55 = vand.u32 4294901760, %v1179_v49 }
  0x90   :  { %v86_v56 = vpop.permute.xlu1 %85  ;;  %v81_v57 = vpop.permute.xlu0 %80 }
  0x91   :  { %v1189_v60 = vpack.c.bf16 %v141_v52, %v138_v43  ;;  %v255_v61 = vsub.f32 %v93_v50, %v141_v52  ;;  %v91_v62 = vadd.f32 %v86_v56, %v63_v53  ;;  %v90_v63 = vadd.f32 %v81_v57, %v62_v54 }
  0x92   :  { %v250_v0 = vsub.f32 %v1179_v49, %v249_v55 }
  0x93   :  { %v95_v2 = vmax.f32 %v91_v62, 0.0  ;;  %v94_v3 = vmax.f32 %v90_v63, 0.0  ;;  %952 = vmatprep.subr.bf16.mxu1 %v1189_v60  ;;  %976 = vmatprep.subr.bf16.mxu0 %v1189_v60  ;;  %v256_v4 = vand.u32 4294901760, %v255_v61  ;;  %v967_v32 = vpack.c.bf16 %v255_v61, %v1179_v49 }
  0x94   :  { %954 = vmatpush3.bf16.msra.mxu1 %v1189_v60  ;;  %978 = vmatpush3.bf16.msra.mxu0 %v1189_v60  ;;  %v251_v10 = vand.u32 4294901760, %v250_v0  ;;  %v107_v34 = vpop.permute.xlu0 %106  ;;  %v112_v35 = vpop.permute.xlu1 %111 }
  0x95   :  { %v147_v7 = vand.u32 4294901760, %v95_v2  ;;  %v144_v8 = vand.u32 4294901760, %v94_v3  ;;  %v257_v9 = vsub.f32 %v255_v61, %v256_v4  ;;  %v983_v21 = vpack.c.bf16 %v256_v4, %v249_v55 }
  0x97   :  { %v269_v12 = vsub.f32 %v95_v2, %v147_v7  ;;  %v955_v13 = vpack.c.bf16 %v147_v7, %v144_v8  ;;  %v262_v16 = vsub.f32 %v94_v3, %v144_v8  ;;  %v258_v17 = vand.u32 4294901760, %v257_v9 }
  0x98   :  { %v117_v36 = vpop.permute.xlu0 %116  ;;  %v122_v37 = vpop.permute.xlu1 %121  ;;  %v798_v2 = vlaneseq }
  0x99   :  { %956 = vmatprep.subr.bf16.mxu1 %v955_v13  ;;  %980 = vmatprep.subr.bf16.mxu0 %v955_v13  ;;  %v959_v20 = vpack.c.bf16 %v258_v17, %v251_v10  ;;  %v263_v22 = vand.u32 4294901760, %v262_v16  ;;  %v270_v23 = vand.u32 4294901760, %v269_v12  ;;  %v971_v33 = vpack.c.bf16 %v269_v12, %v262_v16 }
  0x9a   :  { %958 = vmatpush3.bf16.msra.mxu1 %v955_v13  ;;  %982 = vmatpush3.bf16.msra.mxu0 %v955_v13  ;;  %v799_v5 = vshrl.u32 %v798_v2, 7 }
  0x9b   :  { %960 = vmatprep.subr.bf16.mxu1 %v959_v20  ;;  %984 = vmatprep.subr.bf16.mxu0 %v983_v21  ;;  %v264_v25 = vsub.f32 %v262_v16, %v263_v22  ;;  %v271_v26 = vsub.f32 %v269_v12, %v270_v23  ;;  %v987_v27 = vpack.c.bf16 %v270_v23, %v263_v22 }
  0x9c   :  { %v800_v8 = vsub.s32 0, %v799_v5 }
  0x9d   :  { %876 = vmatmul.mubr.f32.vlgmr.msra.gmra.mrb[0].mxu1 %v220_v18  ;;  %918 = vmatmul.mubr.f32.vlgmr.msra.gmra.mrb[0].mxu0 %v218_v58  ;;  %v265_v29 = vand.u32 4294901760, %v264_v25  ;;  %v272_v30 = vand.u32 4294901760, %v271_v26 }
  0x9e   :  { %962 = vmatpush3.bf16.msra.mxu1 %v959_v20  ;;  %986 = vmatpush3.bf16.msra.mxu0 %v983_v21 }
  0x9f   :  { %988 = vmatprep.subr.bf16.mxu0 %v987_v27  ;;  %878 = vmatprep.mubr.f32.mxu1 %v230_v24  ;;  %v963_v31 = vpack.c.bf16 %v272_v30, %v265_v29 }
  0xa0   :  { %920 = vmatprep.mubr.f32.mxu0 %v228_v1 }
  0xa1   :  { %879 = vmatmul.mubr.f32.gmra.mrb[2].mxu1 %v240_v28  ;;  %964 = vmatprep.subr.bf16.mxu1 %v963_v31 }
  0xa2   :  { %921 = vmatmul.mubr.f32.gmra.mrb[2].mxu0 %v238_v6  ;;  %966 = vmatpush3.bf16.msra.mxu1 %v963_v31 }
  0xa3   :  { %990 = vmatpush3.bf16.msra.mxu0 %v987_v27  ;;  %968 = vmatprep.subr.bf16.mxu1 %v967_v32 }
  0xa4   :  { %992 = vmatprep.subr.bf16.mxu0 %v1189_v60  ;;  %889 = vmatprep.mubr.f32.mxu1 %v1130_v14 }
  0xa5   :  { %931 = vmatprep.mubr.f32.mxu0 %v1130_v14  ;;  %890 = vmatmul.mubr.f32.vlgmr.msra.gmra.mrb[0].mxu1 %v1169_v38 }
  0xa6   :  { %932 = vmatmul.mubr.f32.vlgmr.msra.gmra.mrb[0].mxu0 %v1169_v38  ;;  %970 = vmatpush3.bf16.msra.mxu1 %v967_v32 }
  0xa7   :  { %994 = vmatpush3.bf16.msra.mxu0 %v1189_v60  ;;  %972 = vmatprep.subr.bf16.mxu1 %v971_v33 }
  0xa8   :  { %996 = vmatprep.subr.bf16.mxu0 %v955_v13  ;;  %892 = vmatprep.mubr.f32.mxu1 %v1172_v42 }
  0xa9   :  { %934 = vmatprep.mubr.f32.mxu0 %v1172_v42  ;;  %893 = vmatmul.mubr.f32.gmra.mrb[2].mxu1 %v1177_v48 }
  0xaa   :  { %935 = vmatmul.mubr.f32.gmra.mrb[2].mxu0 %v1177_v48  ;;  %974 = vmatpush3.bf16.msra.mxu1 %v971_v33 }
  0xab   :  { %998 = vmatpush3.bf16.msra.mxu0 %v955_v13  ;;  %903 = vmatprep.mubr.f32.mxu1 %v1133_v15 }
  0xac   :  { %945 = vmatprep.mubr.f32.mxu0 %v1130_v14 }
  0xad   :  { %904 = vmatmul.mubr.f32.vlgmr.msra.gmra.mrb[0].mxu1 %v1175_v47 }
  0xae   :  { %946 = vmatmul.mubr.f32.vlgmr.msra.gmra.mrb[0].mxu0 %v1169_v38  ;;  %906 = vmatprep.mubr.f32.mxu1 %v1182_v51  ;;  %v762_v38 = vpop.permute.xlu0 %761  ;;  %v767_v51 = vpop.permute.xlu1 %766 }
  0xaf   :  { %948 = vmatprep.mubr.f32.mxu0 %v1172_v42 }
  0xb1   :  { %907 = vmatmul.mubr.f32.gmra.mrb[2].mxu1 %v1187_v59 }
  0xb2   :  { %949 = vmatmul.mubr.f32.gmra.mrb[2].mxu0 %v1177_v48  ;;  %v772_v61 = vpop.permute.xlu0 %771  ;;  %v777_v63 = vpop.permute.xlu1 %776 }
  0xb6   :  { %v796_v10 = vpop.permute.xlu0 %795 }
  0xb7   :  { %v801_v12 = vrot.slane %v796_v10, %v800_v8 }
 0x180   :  { %v905_v39 = vpop.f32.mrb[0].mxu1 }
 0x181   :  { %v999_v15 = vadd.f32 %v905_v39, %v112_v35  ;;  %v947_v40 = vpop.f32.mrb[0].mxu0  ;;  %v431_v14 = vpop.f32.mrb[1].mxu1 }
 0x182   :  { %v1001_v41 = vadd.f32 %v431_v14, %v107_v34  ;;  %v729_v43 = vpop.f32.mrb[1].mxu0 }
 0x183   :  { %v1000_v44 = vadd.f32 %v999_v15, %v947_v40 }
 0x184   :  { %v1002_v45 = vadd.f32 %v1001_v41, %v729_v43  ;;  %v908_v46 = vpop.f32.mrb[2].mxu1 }
 0x185   :  { %v752_v47 = vmax.f32 %v1000_v44, 0.0  ;;  %v1003_v42 = vadd.f32 %v908_v46, %v122_v37  ;;  %v950_v49 = vpop.f32.mrb[2].mxu0  ;;  %v445_v50 = vpop.f32.mrb[3].mxu1 }
 0x186   :  { %v751_v48 = vmax.f32 %v1002_v45, 0.0  ;;  %v1005_v52 = vadd.f32 %v445_v50, %v117_v36  ;;  %v741_v53 = vpop.f32.mrb[3].mxu0 }
 0x187   :  { %v780_v54 = vmul.f32 %v767_v51, %v752_v47  ;;  %v1004_v55 = vadd.f32 %v1003_v42, %v950_v49 }
 0x188   :  { %v779_v56 = vmul.f32 %v762_v38, %v751_v48  ;;  %v1006_v57 = vadd.f32 %v1005_v52, %v741_v53 }
 0x189   :  { %v754_v59 = vmax.f32 %v1004_v55, 0.0 }
 0x18a   :  { %v783_v58 = vadd.f32 %v780_v54, %v779_v56  ;;  %v753_v60 = vmax.f32 %v1006_v57, 0.0 }
 0x18b   :  { %v782_v0 = vmul.f32 %v777_v63, %v754_v59 }
 0x18c   :  { %v781_v62 = vmul.f32 %v772_v61, %v753_v60 }
 0x18e   :  { %v784_v1 = vadd.f32 %v783_v58, %v781_v62 }
 0x190   :  { %v785_v3 = vadd.f32 %v784_v1, %v782_v0 }
 0x192   :  { %v786_v4 = vrot.slane %v785_v3, 4 }
 0x194   :  { %v787_v6 = vadd.f32 %v786_v4, %v785_v3 }
 0x196   :  { %v788_v7 = vrot.slane %v787_v6, 2 }
 0x198   :  { %v789_v9 = vadd.f32 %v788_v7, %v787_v6 }
 0x19a   :  { %v790_v11 = vrot.slane %v789_v9, 1 }
 0x19c   :  { %v791_v13 = vadd.f32 %v790_v11, %v789_v9 }
 0x19e   :  { %v802_v16 = vadd.f32 %v801_v12, %v791_v13 }
 0x1a0   :  { %803 = vst [vmem:[#allocation3] sm:$0x1] %v802_v16 }
 0x1a1   :  { %1038 = shalt.err (!%p1035_p4)
}
 0x1a2   :  { %s1039_s20 = scalar_lea.hbm %s1239_s7, 16 }
 0x1a3   :  { %p1040_p5 = scmp.ne.s32.totalorder %s1239_s7, %s1039_s20  ;;  %p1043_p6 = scmp.lt.u32.totalorder %s1039_s20, %s1239_s7 }
 0x1a5   :  { %p1045_p7 = pnand %p1043_p6, %p1040_p5 }
 0x1a7   :  { %1048 = shalt.err (!%p1045_p7)
}
 0x1a8   :  { %813 = dma.vmem_to_hbm [thread:$0]  %s811_s3, 16, %s1239_s7, [#allocation4]  }
 0x1a9   :  { %1049 = dma.done.wait [#allocation4], 16  }
 0x1aa   :  { %1050 = vsyncadd [#allocation4], 4294967280 }
 0x1ab   :  { %817 = vsyncpa [#allocation4], 1 }

</bundles_post_ra>
